<compile_context>
chip_gen: v7x
topology: tpu7x:2x2x1
jax: 0.10.0
libtpu: 0.0.40
codegen_flags: <defaults>
</compile_context>

<pallas_src>
import functools
import math

import jax
import jax.numpy as jnp
from jax.experimental import pallas as pl
from jax.experimental.pallas import tpu as pltpu


def _round_up(v, m):
    return ((v + m - 1) // m) * m


def _pick_cout_tile(c_out):
    # Prefer a tile that yields grid >= 2 (so the two v7x TensorCores both get work),
    # while keeping the tile a multiple of 8 sublanes and <= 256 channels.
    for t in (256, 128, 64, 32, 16, 8):
        if t <= c_out // 2 and c_out % t == 0:
            return t
    for t in (256, 128, 64, 32, 16, 8):
        if c_out % t == 0:
            return t
    return c_out  # full extent (not a multiple of 8): single tile


def _vmem_limit_bytes():
    # Generation-aware cap: ~3/4 of physical VMEM, never above 96 MiB
    # (v5e/v6e: 128 MiB -> 96 MiB; v7x: 64 MiB/TC -> 48 MiB).
    try:
        cap = int(pltpu.get_tpu_info().vmem_capacity_bytes)
    except Exception:
        cap = 64 * 1024 * 1024
    return min(96 * 1024 * 1024, (cap * 3) // 4)


def convbn1d_kernel(x2_ref, w2_ref, gamma_ref, beta_ref, o_ref, *, n_valid, eps):
    """One grid step = one tile of output channels over the full batch-folded extent.

    x2_ref   : (K*C_in, N*LP)  im2col input (lane-dense; lane-padding columns are zero)
    w2_ref   : (C_TILE, K*C_in) conv weight tile, row o / col k*C_in + c = weight[o, c, k]
    gamma_ref: (C_TILE, 1)      BN weight (sublane-major -> free broadcast)
    beta_ref : (C_TILE, 1)      BN bias
    o_ref    : (C_TILE, N*LP)   lane-dense output (invalid lanes sliced off by the wrapper)
    """
    # ---- Conv1d: one wide MXU matmul (contraction = K*C_in), f32 accumulation -------------
    y = jnp.dot(w2_ref[...], x2_ref[...], preferred_element_type=jnp.float32)

    # ---- BatchNorm1d (training mode), fused single-sweep statistics ------------------------
    # Invalid lanes of y are exactly zero (zero im2col columns, no conv bias), so they drop
    # out of both sums; divide by the true valid count N * L_out.
    inv_cnt = 1.0 / float(n_valid)
    s1 = jnp.sum(y, axis=1, keepdims=True)            # (C_TILE, 1)
    s2 = jnp.sum(y * y, axis=1, keepdims=True)        # (C_TILE, 1)
    mean = s1 * inv_cnt
    var = s2 * inv_cnt - mean * mean                  # E[y^2] - mean^2 (f32; biased, as PyTorch)
    inv_std = jax.lax.rsqrt(var + eps)

    o_ref[...] = (gamma_ref[...] * ((y - mean) * inv_std) + beta_ref[...]).astype(o_ref.dtype)


def conv_bn_1d(x, weight, gamma, beta, *, padding=1, eps=1e-5, mxu_bf16=False):
    """ConvBn1d forward.  x: (N, C_in, L), weight: (C_out, C_in, K) -> (N, C_out, L_out)."""
    N, C_in, L = x.shape
    C_out, C_in_w, K = weight.shape
    assert C_in_w == C_in, "groups != 1 not supported"
    L_out = L + 2 * padding - (K - 1)                  # stride=1, dilation=1

    LP = _round_up(max(L_out, 128), 128)               # lane-dense per-batch segment length
    NLP = N * LP
    KC = K * C_in
    C_TILE = _pick_cout_tile(C_out)
    grid = (C_out // C_TILE,)

    mxu_dtype = jnp.bfloat16 if mxu_bf16 else jnp.float32

    # ---- layout plumbing in the wrapper (runs once; no per-grid-step rebuild) --------------
    xpad = jnp.pad(x, ((0, 0), (0, 0), (padding, padding)))          # (N, C_in, L + 2p)
    # Tap k of the conv reads xpad[:, :, k : k + L_out].
    taps = jnp.stack([xpad[:, :, k:k + L_out] for k in range(K)], axis=0)  # (K, N, C_in, L_out)
    taps = jnp.pad(taps, ((0, 0), (0, 0), (0, 0), (0, LP - L_out)))  # zero lane padding
    # Row index k*C_in + c, column index n*LP + t  -> lane-dense (K*C_in, N*LP).
    x2 = jnp.transpose(taps, (0, 2, 1, 3)).reshape(KC, NLP).astype(mxu_dtype)

    # weight (C_out, C_in, K) -> (C_out, K*C_in) with column k*C_in + c = weight[o, c, k].
    w2 = jnp.transpose(weight, (0, 2, 1)).reshape(C_out, KC).astype(mxu_dtype)
    g2 = jnp.reshape(gamma, (C_out, 1)).astype(jnp.float32)
    b2 = jnp.reshape(beta, (C_out, 1)).astype(jnp.float32)

    kernel = functools.partial(convbn1d_kernel, n_valid=N * L_out, eps=eps)

    conv_flops = 2 * C_out * KC * NLP                  # what the MXU actually does
    bn_flops = 8 * C_out * NLP
    bytes_accessed = int(
        x2.size * x2.dtype.itemsize + w2.size * w2.dtype.itemsize
        + g2.size * 4 + b2.size * 4
        + C_out * NLP * x.dtype.itemsize)

    y2d = pl.pallas_call(
        kernel,
        out_shape=jax.ShapeDtypeStruct((C_out, NLP), x.dtype),
        grid_spec=pltpu.PrefetchScalarGridSpec(
            num_scalar_prefetch=0,
            grid=grid,
            in_specs=[
                pl.BlockSpec((KC, NLP), lambda i: (0, 0)),        # im2col input (resident; shared)
                pl.BlockSpec((C_TILE, KC), lambda i: (i, 0)),     # weight tile
                pl.BlockSpec((C_TILE, 1), lambda i: (i, 0)),      # gamma tile
                pl.BlockSpec((C_TILE, 1), lambda i: (i, 0)),      # beta tile
            ],
            out_specs=pl.BlockSpec((C_TILE, NLP), lambda i: (i, 0)),
        ),
        compiler_params=pltpu.CompilerParams(
            dimension_semantics=("parallel",),         # channel tiles shard across TCs (v7x)
            vmem_limit_bytes=_vmem_limit_bytes(),
        ),
        cost_estimate=pl.CostEstimate(flops=conv_flops + bn_flops,
                                      transcendentals=int(C_out),
                                      bytes_accessed=bytes_accessed),
    )(x2, w2, g2, b2)

    # Glue: slice off lane padding and return PyTorch's (N, C_out, L_out) layout.
    y = jnp.reshape(y2d, (C_out, N, LP))[:, :, :L_out]
    return jnp.transpose(y, (1, 0, 2))


def _reference(x, weight, gamma, beta, *, padding=1, eps=1e-5):
    """Pure-JAX reference: Conv1d (no bias) + BatchNorm1d training-mode."""
    y = jax.lax.conv_general_dilated(
        x, weight,
        window_strides=(1,), padding=[(padding, padding)],
        dimension_numbers=("NCH", "OIH", "NCH"),
    )
    mean = jnp.mean(y, axis=(0, 2), keepdims=True)
    var = jnp.mean((y - mean) ** 2, axis=(0, 2), keepdims=True)
    return gamma.reshape(1, -1, 1) * (y - mean) * jax.lax.rsqrt(var + eps) + beta.reshape(1, -1, 1)


if __name__ == "__main__":
    # Shapes consistent with ConvBn1d(in_channels=4, out_channels=8, kernel_size=3, padding=1)
    N, C_in, C_out, L, K = 2, 4, 8, 16, 3

    key = jax.random.PRNGKey(0)
    kx, kw, kg, kb = jax.random.split(key, 4)
    x = jax.random.normal(kx, (N, C_in, L), dtype=jnp.float32)

    # Deterministic conv-weight init (PyTorch-style kaiming-uniform bound), no bias.
    fan_in = C_in * K
    bound = 1.0 / math.sqrt(fan_in)
    weight = jax.random.uniform(kw, (C_out, C_in, K), jnp.float32, -bound, bound)

    # Non-trivial BN affine params to exercise the (C_out, 1) broadcast path.
    gamma = jax.random.uniform(kg, (C_out,), jnp.float32, 0.5, 1.5)
    beta = 0.1 * jax.random.normal(kb, (C_out,), jnp.float32)

    ref = _reference(x, weight, gamma, beta, padding=1)

    # f32 MXU path: matches the f32 PyTorch module numerics tightly.
    out = conv_bn_1d(x, weight, gamma, beta, padding=1, mxu_bf16=False)
    out = jax.block_until_ready(out)
    assert out.shape == (N, C_out, L)
    assert jnp.allclose(out, ref, atol=1e-4, rtol=1e-4), "mismatch vs reference (f32 path)"

    # bf16-MXU fast path (f32 accumulation / BN): smoke-check at a loose tolerance.
    out_bf16 = conv_bn_1d(x, weight, gamma, beta, padding=1, mxu_bf16=True)
    out_bf16 = jax.block_until_ready(out_bf16)
    assert jnp.allclose(out_bf16, ref, atol=2e-1, rtol=2e-1), "mismatch vs reference (bf16 path)"

    print("KERNEL_OK")
</pallas_src>

<mosaic_0001>
module attributes {stable_mosaic.version = 11 : i64} {
  func.func @convbn1d_kernel(%arg0: i32, %arg1: memref<12x256xf32, #tpu.memory_space<vmem>>, %arg2: memref<8x12xf32, #tpu.memory_space<vmem>>, %arg3: memref<8x1xf32, #tpu.memory_space<vmem>>, %arg4: memref<8x1xf32, #tpu.memory_space<vmem>>, %arg5: memref<8x256xf32, #tpu.memory_space<vmem>>) attributes {dimension_semantics = [#tpu.dimension_semantics<parallel>], iteration_bounds = array<i64: 1>, scalar_prefetch = 0 : i64, scratch_operands = 0 : i64, tpu.core_type = #tpu.core_type<tc>, window_params = [{pipeline_mode = #tpu.pipeline_mode<synchronous>, transform_indices = @transform_0, window_bounds = array<i64: 12, 256>}, {transform_indices = @transform_1, window_bounds = array<i64: 8, 12>}, {transform_indices = @transform_2, window_bounds = array<i64: 8, 1>}, {transform_indices = @transform_3, window_bounds = array<i64: 8, 1>}, {transform_indices = @transform_4, window_bounds = array<i64: 8, 256>}]} {
    %c0 = arith.constant 0 : index
    %c0_0 = arith.constant 0 : index
    %0 = vector.load %arg2[%c0, %c0_0] : memref<8x12xf32, #tpu.memory_space<vmem>>, vector<8x12xf32>
    %c0_1 = arith.constant 0 : index
    %c0_2 = arith.constant 0 : index
    %1 = vector.load %arg1[%c0_1, %c0_2] : memref<12x256xf32, #tpu.memory_space<vmem>>, vector<12x256xf32>
    %cst = arith.constant dense<0.000000e+00> : vector<8x256xf32>
    %2 = tpu.matmul %0, %1, %cst {dimension_numbers = #tpu.dot_dimension_numbers<[1], [0], [0], [1], [0, 0, 1, 1], [], []>} : vector<8x12xf32>, vector<12x256xf32>, vector<8x256xf32> -> vector<8x256xf32>
    %cst_3 = arith.constant dense<0.000000e+00> : vector<8xf32>
    %3 = vector.multi_reduction <add>, %2, %cst_3 [1] : vector<8x256xf32> to vector<8xf32>
    %4 = vector.shape_cast %3 : vector<8xf32> to vector<8x1xf32>
    %5 = arith.mulf %2, %2 : vector<8x256xf32>
    %cst_4 = arith.constant dense<0.000000e+00> : vector<8xf32>
    %6 = vector.multi_reduction <add>, %5, %cst_4 [1] : vector<8x256xf32> to vector<8xf32>
    %7 = vector.shape_cast %6 : vector<8xf32> to vector<8x1xf32>
    %cst_5 = arith.constant 3.125000e-02 : f32
    %8 = vector.broadcast %cst_5 : f32 to vector<8x1xf32>
    %9 = arith.mulf %4, %8 : vector<8x1xf32>
    %cst_6 = arith.constant 3.125000e-02 : f32
    %10 = vector.broadcast %cst_6 : f32 to vector<8x1xf32>
    %11 = arith.mulf %7, %10 : vector<8x1xf32>
    %12 = arith.mulf %9, %9 : vector<8x1xf32>
    %13 = arith.subf %11, %12 : vector<8x1xf32>
    %cst_7 = arith.constant 9.99999974E-6 : f32
    %14 = vector.broadcast %cst_7 : f32 to vector<8x1xf32>
    %15 = arith.addf %13, %14 : vector<8x1xf32>
    %16 = math.rsqrt %15 : vector<8x1xf32>
    %c0_8 = arith.constant 0 : index
    %c0_9 = arith.constant 0 : index
    %17 = vector.load %arg3[%c0_8, %c0_9] : memref<8x1xf32, #tpu.memory_space<vmem>>, vector<8x1xf32>
    %18 = vector.broadcast %9 : vector<8x1xf32> to vector<8x256xf32>
    %19 = arith.subf %2, %18 : vector<8x256xf32>
    %20 = vector.broadcast %16 : vector<8x1xf32> to vector<8x256xf32>
    %21 = arith.mulf %19, %20 : vector<8x256xf32>
    %22 = vector.broadcast %17 : vector<8x1xf32> to vector<8x256xf32>
    %23 = arith.mulf %22, %21 : vector<8x256xf32>
    %c0_10 = arith.constant 0 : index
    %c0_11 = arith.constant 0 : index
    %24 = vector.load %arg4[%c0_10, %c0_11] : memref<8x1xf32, #tpu.memory_space<vmem>>, vector<8x1xf32>
    %25 = vector.broadcast %24 : vector<8x1xf32> to vector<8x256xf32>
    %26 = arith.addf %23, %25 : vector<8x256xf32>
    %c0_12 = arith.constant 0 : index
    %c0_13 = arith.constant 0 : index
    %27 = vector.load %arg5[%c0_12, %c0_13] : memref<8x256xf32, #tpu.memory_space<vmem>>, vector<8x256xf32>
    tpu.vector_store %arg5[%c0_12, %c0_13], %26 {strides = array<i32>} : memref<8x256xf32, #tpu.memory_space<vmem>>, vector<8x256xf32>,
    return
  }
  func.func @transform_0(%arg0: i32) -> (i32, i32) {
    %c0_i32 = arith.constant 0 : i32
    %c0_i32_0 = arith.constant 0 : i32
    %c0_i32_1 = arith.constant 0 : i32
    return %c0_i32, %c0_i32_0 : i32, i32
  }
  func.func @transform_1(%arg0: i32) -> (i32, i32) {
    %c0_i32 = arith.constant 0 : i32
    %c0_i32_0 = arith.constant 0 : i32
    return %arg0, %c0_i32 : i32, i32
  }
  func.func @transform_2(%arg0: i32) -> (i32, i32) {
    %c0_i32 = arith.constant 0 : i32
    %c0_i32_0 = arith.constant 0 : i32
    return %arg0, %c0_i32 : i32, i32
  }
  func.func @transform_3(%arg0: i32) -> (i32, i32) {
    %c0_i32 = arith.constant 0 : i32
    %c0_i32_0 = arith.constant 0 : i32
    return %arg0, %c0_i32 : i32, i32
  }
  func.func @transform_4(%arg0: i32) -> (i32, i32) {
    %c0_i32 = arith.constant 0 : i32
    %c0_i32_0 = arith.constant 0 : i32
    return %arg0, %c0_i32 : i32, i32
  }
}

</mosaic_0001>

<bundles_post_ra>
// kernel: tpu_custom_call.1
= control target key start
LH: loop header
LB: loop body
LE: loop exit
PB: predicated region body
PF: predicated region fallthrough
CT: control target
= control target key end

     0   :  { %9 = vsyncpa [#allocation3], 0  ;;  %s303_s0 = inlined_call_operand.hbm [shape: f32[12,256], index: 0, kind: input, shape index: {}]   ;;  %s304_s1 = inlined_call_operand.vmem [shape: f32[8,12], index: 1, kind: input, shape index: {}]   ;;  %s305_s2 = inlined_call_operand.vmem [shape: f32[8,1], index: 2, kind: input, shape index: {}]   ;;  %s306_s3 = inlined_call_operand.vmem [shape: f32[8,1], index: 3, kind: input, shape index: {}]   ;;  %s307_s4 = inlined_call_operand.hbm [shape: f32[8,256], index: 4, kind: output, shape index: {}]  }
   0x1   :  { %10 = vsyncpa [#allocation4], 0  ;;  %s238_s15 = smov [#allocation2]   ;;  %s190_s19 = scalar_lea.hbm %s303_s0, 512 }
   0x2   :  { %s16_s16 = sshll.u32 %s238_s15, 4  ;;  %p191_p0 = scmp.ne.s32.totalorder %s303_s0, %s190_s19  ;;  %s17_s16 = int_to_ptr.vmem [resolvable:$true] %s16_s16 }
   0x3   :  { %p194_p1 = scmp.lt.u32.totalorder %s190_s19, %s303_s0 }
   0x5   :  { %p196_p2 = pnand %p194_p1, %p191_p0 }
   0x7   :  { %199 = shalt.err (!%p196_p2)
}
   0x8   :  { %s200_s24 = scalar_lea.vmem %s17_s16, 512  ;;  %p205_p4 = scmp.lt.s32.totalorder %s17_s16, %s17_s16 }
   0x9   :  { %p201_p3 = scmp.ne.s32.totalorder %s17_s16, %s200_s24  ;;  %p206_p5 = scmp.lt.s32.totalorder %s200_s24, %s200_s24 }
   0xb   :  { %p207_p6 = por %p206_p5, %p205_p4 }
   0xd   :  { %p208_p7 = pnand %p207_p6, %p201_p3 }
   0xf   :  { %211 = shalt.err (!%p208_p7)
}
  0x10   :  { %s239_s25 = smov 256   ;;  %s240_s26 = smov 16  }
  0x11   :  { %22 = dma.hbm_to_vmem [thread:$0]  %s303_s0, 512, %s17_s16, [#allocation3], %s239_s25, %s239_s25, %s240_s26  }
  0x12   :  { %234 = dma.done.wait [#allocation3], 512  }
  0x13   :  { %235 = vsyncadd [#allocation3], 4294966784  ;;  %v241_v0 = vmov 0.0   ;;  %vm41_vm0 = vcmask 1043456   ;;  %vm242_vm1 = vmmov 1   ;;  %v34_v1 = vld [vmem:[#allocation2 + $0x8] sm:$0xff] }
  0x14   :  { %112 = vmatprep.mubr.f32.mxu0 %v241_v0  ;;  %vm174_vm2 = vmpackc.low %vm41_vm0, %vm242_vm1  ;;  %v36_v2 = vld [vmem:[#allocation2 + $0x18] sm:$0xf]  ;;  %v33_v3 = vld [vmem:[#allocation2] sm:$0xff]  ;;  %vm37_vm3 = vcmask 97280   ;;  %v243_v9 = vmov 0  }
  0x15   :  { %v173_v4 = vpack.c.bf16 %v36_v2, %v34_v1  ;;  %v35_v5 = vld [vmem:[#allocation2 + $0x10] sm:$0xf]  ;;  %v32_v7 = vld [vmem:[%s304_s1] sm:$0xff]  ;;  %186 = vset.pattern.permute.xlu1 %v243_v9  ;;  %187 = vset.pattern.permute.xlu0 %v243_v9  ;;  %s244_s1 = smov [#allocation5]  }
  0x16   :  { %v176_v6 = vpack.c.bf16 %v35_v5, %v33_v3  ;;  %v133_v8 = vld [vmem:[%s305_s2] sm:$0xff]  ;;  %s161_s2 = sshll.u32 %s244_s1, 4  ;;  %s162_s2 = int_to_ptr.vmem [resolvable:$true] %s161_s2 }
  0x17   :  { %175 = vmatprep.subr.msk.bf16.mxu0 %vm174_vm2, %v173_v4  ;;  %140 = vperm.xlu1 %186, %v133_v8   ;;  %v145_v10 = vld [vmem:[%s306_s3] sm:$0xff]  ;;  %s212_s3 = scalar_lea.vmem %s162_s2, 256  ;;  %p217_p9 = scmp.lt.s32.totalorder %s162_s2, %s162_s2 }
  0x18   :  { %178 = vmatpush1.bf16.msk.msra.mxu0 %vm174_vm2, %v176_v6  ;;  %p213_p8 = scmp.ne.s32.totalorder %s162_s2, %s212_s3  ;;  %p218_p10 = scmp.lt.s32.totalorder %s212_s3, %s212_s3 }
  0x1a   :  { %p219_p11 = por %p218_p10, %p217_p9 }
  0x1b   :  { %172 = vmatmul.mubr.msk.f32.vlgmr.msra.gmra.mrb[0].mxu0 %vm37_vm3, %v32_v7  ;;  %148 = vperm.xlu1 %186, %v145_v10  }
  0x1c   :  { %p220_p12 = pnand %p219_p11, %p213_p8 }
  0x96   :  { %v141_v24 = vpop.permute.xlu1 %140 }
  0x9a   :  { %v149_v32 = vpop.permute.xlu1 %148 }
  0xee   :  { %v114_v11 = vpop.f32.mrb[0].mxu0 }
  0xef   :  { %v116_v12 = vpop.f32.mrb[1].mxu0  ;;  %v122_v13 = vmul.f32 %v114_v11, %v114_v11 }
  0xf0   :  { %v123_v14 = vmul.f32 %v116_v12, %v116_v12  ;;  %v119_v15 = vadd.f32 %v116_v12, %v114_v11 }
  0xf2   :  { %120 = vadd.xlane.f32.xlu0 %v119_v15  ;;  %v124_v16 = vadd.f32 %v123_v14, %v122_v13 }
  0xf6   :  { %125 = vadd.xlane.f32.xlu0 %v124_v16 }
 0x17f   :  { %v121_v17 = vpop.xlane.xlu0 %120 }
 0x180   :  { %v127_v18 = vmul.f32 0.03125, %v121_v17 }
 0x182   :  { %v129_v20 = vmul.f32 %v127_v18, %v127_v18  ;;  %v134_v25 = vsub.f32 %v114_v11, %v127_v18  ;;  %v135_v26 = vsub.f32 %v116_v12, %v127_v18 }
 0x183   :  { %v126_v19 = vpop.xlane.xlu0 %125 }
 0x184   :  { %v128_v21 = vmul.f32 0.03125, %v126_v19 }
 0x186   :  { %v130_v22 = vsub.f32 %v128_v21, %v129_v20 }
 0x188   :  { %v131_v23 = vadd.f32 1e-05, %v130_v22 }
 0x18a   :  { %188 = vrsqrt.f32 %v131_v23 }
 0x194   :  { %v189_v27 = vpop.eup %188 }
 0x195   :  { %v136_v28 = vmul.f32 %v189_v27, %v134_v25  ;;  %v137_v29 = vmul.f32 %v189_v27, %v135_v26 }
 0x197   :  { %v143_v30 = vmul.f32 %v141_v24, %v136_v28  ;;  %v144_v31 = vmul.f32 %v141_v24, %v137_v29 }
 0x199   :  { %v151_v33 = vadd.f32 %v149_v32, %v143_v30  ;;  %v152_v34 = vadd.f32 %v149_v32, %v144_v31 }
 0x19b   :  { %153 = vst [vmem:[#allocation5] sm:$0xff] %v151_v33  ;;  %154 = vst [vmem:[#allocation5 + $0x8] sm:$0xff] %v152_v34 }
 0x19c   :  { %223 = shalt.err (!%p220_p12)
}
 0x19d   :  { %s224_s10 = scalar_lea.hbm %s307_s4, 256 }
 0x19e   :  { %p225_p13 = scmp.ne.s32.totalorder %s307_s4, %s224_s10  ;;  %p228_p0 = scmp.lt.u32.totalorder %s224_s10, %s307_s4 }
 0x1a0   :  { %p230_p1 = pnand %p228_p0, %p225_p13 }
 0x1a2   :  { %233 = shalt.err (!%p230_p1)
}
 0x1a3   :  { %164 = dma.vmem_to_hbm [thread:$0]  %s162_s2, 256, %s307_s4, [#allocation4]  }
 0x1a4   :  { %236 = dma.done.wait [#allocation4], 256  }
 0x1a5   :  { %237 = vsyncadd [#allocation4], 4294967040 }
 0x1a6   :  { %168 = vsyncpa [#allocation3], 1 }
 0x1a7   :  { %169 = vsyncpa [#allocation4], 1 }

</bundles_post_ra>
